<compile_context>
chip_gen: v7x
topology: tpu7x:2x2x1
jax: 0.10.0
libtpu: 0.0.40
codegen_flags: <defaults>
</compile_context>

<pallas_src>
import numpy as np
import jax
import jax.numpy as jnp
from jax.experimental import pallas as pl
from jax.experimental.pallas import tpu as pltpu

# ------------------------------- static sizes -------------------------------

N_FFT = 512
HOP = 256                        # == N_FFT // 2 (enables the chunk decomposition)
N_MELS = 80
N_FREQS_FULL = N_FFT // 2 + 1    # 257 bins in torchaudio's spectrogram
N_FREQS = 256                    # Nyquist bin dropped (zero mel weight for f_max=sr/2)
NMEL_P = 128                     # 80  -> 128 (lane padding)
NMFCC_P = 128                    # n_mfcc -> 128 (lane-dense output block)


# ----------------------- constant tables (match torchaudio) -----------------

def _make_windowed_dft():
    """Hann-window-folded real-DFT matrix (bins 0..255), split into the
    top/bottom 256-row halves of the 512-sample frame.

    Returns (Cw_top, Cw_bot), each (HOP, 2*N_FREQS) = (256, 512) float32 with
    column layout [cos | sin]."""
    n = np.arange(N_FFT, dtype=np.float64)
    win = 0.5 * (1.0 - np.cos(2.0 * np.pi * n / N_FFT))        # periodic Hann
    k = np.arange(N_FREQS, dtype=np.float64)
    ang = 2.0 * np.pi * n[:, None] * k[None, :] / N_FFT
    trig = np.concatenate(
        [win[:, None] * np.cos(ang), win[:, None] * np.sin(ang)], axis=1
    ).astype(np.float32)                                       # (512, 512)
    return trig[:HOP], trig[HOP:]                              # (256, 512) each


def _make_mel_fb(sample_rate, f_min=0.0, f_max=None):
    """torchaudio melscale_fbanks (mel_scale='htk', norm=None), Nyquist bin
    dropped, padded to (N_FREQS, NMEL_P) = (256, 128)."""
    if f_max is None:
        f_max = sample_rate // 2
    all_freqs = np.linspace(0.0, sample_rate // 2, N_FREQS_FULL)
    m_min = 2595.0 * np.log10(1.0 + f_min / 700.0)
    m_max = 2595.0 * np.log10(1.0 + f_max / 700.0)
    m_pts = np.linspace(m_min, m_max, N_MELS + 2)
    f_pts = 700.0 * (10.0 ** (m_pts / 2595.0) - 1.0)
    f_diff = f_pts[1:] - f_pts[:-1]                            # (n_mels + 1,)
    slopes = f_pts[None, :] - all_freqs[:, None]               # (257, n_mels + 2)
    down = -slopes[:, :-2] / f_diff[:-1]
    up = slopes[:, 2:] / f_diff[1:]
    fb = np.maximum(0.0, np.minimum(down, up))                 # (257, 80)
    # Nyquist-drop guard: the discarded row must carry zero weight (true for
    # the default f_max = sample_rate / 2 on the HTK scale).
    assert np.abs(fb[N_FREQS:, :]).max() < 1e-10, \
        "cannot drop Nyquist bin: non-zero mel weight for this f_max"
    fb_p = np.zeros((N_FREQS, NMEL_P), dtype=np.float32)
    fb_p[:, :N_MELS] = fb[:N_FREQS]
    return fb_p


def _make_dct(n_mfcc):
    """torchaudio create_dct (norm=None), padded to (NMEL_P, NMFCC_P).
    Rows for padded mel channels (>= 80) are exactly zero so log(1e-6) from
    zero-padded mel bins cannot leak into any coefficient."""
    n = np.arange(N_MELS, dtype=np.float64)[:, None]
    k = np.arange(n_mfcc, dtype=np.float64)[None, :]
    dct = 2.0 * np.cos(np.pi / N_MELS * (n + 0.5) * k)         # (80, n_mfcc)
    dct_p = np.zeros((NMEL_P, NMFCC_P), dtype=np.float32)
    dct_p[:N_MELS, :n_mfcc] = dct
    return dct_p


# ----------------------------------- kernel ---------------------------------

def _mfcc_kernel(xa_ref, xb_ref, cwa_ref, cwb_ref, mel_ref, dct_ref, out_ref):
    # xa/xb: (TM, 256) bf16 first/second half of each 512-sample frame
    # cwa/cwb: (256, 512) bf16 window-folded [cos|sin] DFT halves
    # mel: (256, 128) f32   dct: (128, 128) f32   out: (TM, 128) f32
    trig = jnp.dot(xa_ref[...], cwa_ref[...],
                   preferred_element_type=jnp.float32)
    trig = trig + jnp.dot(xb_ref[...], cwb_ref[...],
                          preferred_element_type=jnp.float32)          # (TM, 512)
    re = trig[:, :N_FREQS]                                             # vreg-granular split
    im = trig[:, N_FREQS:]
    power = re * re + im * im                                          # |STFT|^2  (VPU)
    mel = jnp.dot(power, mel_ref[...], preferred_element_type=jnp.float32)
    logmel = jnp.log(mel + 1e-6)                                       # log_mels=True (EUP)
    out_ref[...] = jnp.dot(logmel, dct_ref[...],
                           preferred_element_type=jnp.float32)         # (TM, 128)


# ---------------------------------- wrapper ----------------------------------

def _round_up(x, m):
    return ((x + m - 1) // m) * m


def _pick_frame_tile(m_rows):
    """Frame-tile size.  256 on v5*, 512 on v6e/v7x for big inputs; keep the
    grid >= 2 steps when possible so both v7x TensorCores get work.  Tiny
    inputs use a single minimally-padded tile (multiple of 16 for bf16)."""
    try:
        kind = jax.devices()[0].device_kind.lower()
    except Exception:
        kind = ""
    target = 256 if "v5" in kind else 512
    m16 = _round_up(max(m_rows, 1), 16)
    if m16 <= 256:
        return m16                      # tiny: one tile, minimal padding
    return min(target, _round_up((m_rows + 1) // 2, 128))


def mfcc_forward(wav, n_mfcc=13, normalise=False, sample_rate=16000,
                 use_bf16_dft=True):
    """Equivalent of MFCC(n_mfcc, normalise).forward(wav); wav: (B, T) float32."""
    assert n_mfcc <= NMFCC_P
    B, T = wav.shape
    F = 1 + (T - N_FFT) // HOP                    # center=False framing
    assert F >= 1, "signal too short for one frame"

    frame_dtype = jnp.bfloat16 if use_bf16_dft else jnp.float32

    # Chunk view of the audio: frame f = [chunk_f | chunk_{f+1}], 256-sample
    # chunks (valid because hop == n_fft / 2).  No duplicated 512-wide frame
    # gather in HBM.
    n_chunks = F + 1
    chunks = wav[:, :n_chunks * HOP].astype(frame_dtype).reshape(B, n_chunks, HOP)
    xa = chunks[:, :F, :].reshape(B * F, HOP)     # first half of each frame
    xb = chunks[:, 1:, :].reshape(B * F, HOP)     # second half of each frame

    M = B * F
    TM = _pick_frame_tile(M)
    Mp = _round_up(M, TM)
    if Mp != M:
        pad = ((0, Mp - M), (0, 0))
        xa = jnp.pad(xa, pad)
        xb = jnp.pad(xb, pad)

    cwa_np, cwb_np = _make_windowed_dft()
    cwa = jnp.asarray(cwa_np).astype(frame_dtype)          # (256, 512)
    cwb = jnp.asarray(cwb_np).astype(frame_dtype)
    mel_fb = jnp.asarray(_make_mel_fb(sample_rate))        # (256, 128) f32
    dct_m = jnp.asarray(_make_dct(n_mfcc))                 # (128, 128) f32

    out = pl.pallas_call(
        _mfcc_kernel,
        out_shape=jax.ShapeDtypeStruct((Mp, NMFCC_P), jnp.float32),
        grid=(Mp // TM,),
        in_specs=[
            pl.BlockSpec((TM, HOP), lambda t: (t, 0)),
            pl.BlockSpec((TM, HOP), lambda t: (t, 0)),
            pl.BlockSpec((HOP, 2 * N_FREQS), lambda t: (0, 0)),
            pl.BlockSpec((HOP, 2 * N_FREQS), lambda t: (0, 0)),
            pl.BlockSpec((N_FREQS, NMEL_P), lambda t: (0, 0)),
            pl.BlockSpec((NMEL_P, NMFCC_P), lambda t: (0, 0)),
        ],
        out_specs=pl.BlockSpec((TM, NMFCC_P), lambda t: (t, 0)),
        compiler_params=pltpu.CompilerParams(dimension_semantics=("parallel",)),
    )(xa, xb, cwa, cwb, mel_fb, dct_m)

    # (Mp, 128) -> (B, n_mfcc, F) torch/torchaudio layout
    feature = out[:M, :n_mfcc].reshape(B, F, n_mfcc)
    feature = jnp.transpose(feature, (0, 2, 1))

    if normalise:
        # Elementwise / small-reduction post-processing (cheap glue, plain JAX).
        o_th = jnp.exp(feature[:, 0, :] / 500.0) - 1.0             # (B, F)
        am = jnp.max(o_th, axis=1)                                 # (B,)
        o_th = o_th / (am + 0.01)[:, None]
        above = feature[:, 1:, :] / 150.0
        feature = jnp.concatenate((o_th[:, None, :], above), axis=1)
    return feature


if __name__ == "__main__":
    key = jax.random.PRNGKey(0)
    B = 2
    T = 512 + 256 * 7          # -> 8 frames with n_fft=512, hop=256, center=False
    n_mfcc = 13
    wav = jax.random.normal(key, (B, T), dtype=jnp.float32)

    feat = jax.block_until_ready(mfcc_forward(wav, n_mfcc=n_mfcc, normalise=False))
    assert feat.shape == (B, n_mfcc, 8), feat.shape
    assert bool(jnp.all(jnp.isfinite(feat)))

    feat_n = jax.block_until_ready(mfcc_forward(wav, n_mfcc=n_mfcc, normalise=True))
    assert feat_n.shape == (B, n_mfcc, 8)
    assert bool(jnp.all(jnp.isfinite(feat_n)))

    print("KERNEL_OK")
</pallas_src>

<mosaic_0001>
module attributes {stable_mosaic.version = 11 : i64} {
  func.func @_mfcc_kernel(%arg0: i32, %arg1: memref<16x256xbf16, #tpu.memory_space<vmem>>, %arg2: memref<16x256xbf16, #tpu.memory_space<vmem>>, %arg3: memref<256x512xbf16, #tpu.memory_space<vmem>>, %arg4: memref<256x512xbf16, #tpu.memory_space<vmem>>, %arg5: memref<256x128xf32, #tpu.memory_space<vmem>>, %arg6: memref<128x128xf32, #tpu.memory_space<vmem>>, %arg7: memref<16x128xf32, #tpu.memory_space<vmem>>) attributes {dimension_semantics = [#tpu.dimension_semantics<parallel>], iteration_bounds = array<i64: 1>, scalar_prefetch = 0 : i64, scratch_operands = 0 : i64, tpu.core_type = #tpu.core_type<tc>, window_params = [{transform_indices = @transform_0, window_bounds = array<i64: 16, 256>}, {transform_indices = @transform_1, window_bounds = array<i64: 16, 256>}, {pipeline_mode = #tpu.pipeline_mode<synchronous>, transform_indices = @transform_2, window_bounds = array<i64: 256, 512>}, {pipeline_mode = #tpu.pipeline_mode<synchronous>, transform_indices = @transform_3, window_bounds = array<i64: 256, 512>}, {pipeline_mode = #tpu.pipeline_mode<synchronous>, transform_indices = @transform_4, window_bounds = array<i64: 256, 128>}, {pipeline_mode = #tpu.pipeline_mode<synchronous>, transform_indices = @transform_5, window_bounds = array<i64: 128, 128>}, {transform_indices = @transform_6, window_bounds = array<i64: 16, 128>}]} {
    %c0 = arith.constant 0 : index
    %c0_0 = arith.constant 0 : index
    %0 = vector.load %arg1[%c0, %c0_0] : memref<16x256xbf16, #tpu.memory_space<vmem>>, vector<16x256xbf16>
    %c0_1 = arith.constant 0 : index
    %c0_2 = arith.constant 0 : index
    %1 = vector.load %arg3[%c0_1, %c0_2] : memref<256x512xbf16, #tpu.memory_space<vmem>>, vector<256x512xbf16>
    %cst = arith.constant dense<0.000000e+00> : vector<16x512xf32>
    %2 = tpu.matmul %0, %1, %cst {dimension_numbers = #tpu.dot_dimension_numbers<[1], [0], [0], [1], [0, 0, 1, 1], [], []>} : vector<16x256xbf16>, vector<256x512xbf16>, vector<16x512xf32> -> vector<16x512xf32>
    %c0_3 = arith.constant 0 : index
    %c0_4 = arith.constant 0 : index
    %3 = vector.load %arg2[%c0_3, %c0_4] : memref<16x256xbf16, #tpu.memory_space<vmem>>, vector<16x256xbf16>
    %c0_5 = arith.constant 0 : index
    %c0_6 = arith.constant 0 : index
    %4 = vector.load %arg4[%c0_5, %c0_6] : memref<256x512xbf16, #tpu.memory_space<vmem>>, vector<256x512xbf16>
    %cst_7 = arith.constant dense<0.000000e+00> : vector<16x512xf32>
    %5 = tpu.matmul %3, %4, %cst_7 {dimension_numbers = #tpu.dot_dimension_numbers<[1], [0], [0], [1], [0, 0, 1, 1], [], []>} : vector<16x256xbf16>, vector<256x512xbf16>, vector<16x512xf32> -> vector<16x512xf32>
    %6 = arith.addf %2, %5 : vector<16x512xf32>
    %7 = vector.extract_strided_slice %6 {offsets = [0, 0], sizes = [16, 256], strides = [1, 1]} : vector<16x512xf32> to vector<16x256xf32>
    %8 = vector.extract_strided_slice %6 {offsets = [0, 256], sizes = [16, 256], strides = [1, 1]} : vector<16x512xf32> to vector<16x256xf32>
    %9 = arith.mulf %7, %7 : vector<16x256xf32>
    %10 = arith.mulf %8, %8 : vector<16x256xf32>
    %11 = arith.addf %9, %10 : vector<16x256xf32>
    %c0_8 = arith.constant 0 : index
    %c0_9 = arith.constant 0 : index
    %12 = vector.load %arg5[%c0_8, %c0_9] : memref<256x128xf32, #tpu.memory_space<vmem>>, vector<256x128xf32>
    %cst_10 = arith.constant dense<0.000000e+00> : vector<16x128xf32>
    %13 = tpu.matmul %11, %12, %cst_10 {dimension_numbers = #tpu.dot_dimension_numbers<[1], [0], [0], [1], [0, 0, 1, 1], [], []>} : vector<16x256xf32>, vector<256x128xf32>, vector<16x128xf32> -> vector<16x128xf32>
    %cst_11 = arith.constant 9.99999997E-7 : f32
    %14 = vector.broadcast %cst_11 : f32 to vector<16x128xf32>
    %15 = arith.addf %13, %14 : vector<16x128xf32>
    %16 = math.log %15 : vector<16x128xf32>
    %c0_12 = arith.constant 0 : index
    %c0_13 = arith.constant 0 : index
    %17 = vector.load %arg6[%c0_12, %c0_13] : memref<128x128xf32, #tpu.memory_space<vmem>>, vector<128x128xf32>
    %cst_14 = arith.constant dense<0.000000e+00> : vector<16x128xf32>
    %18 = tpu.matmul %16, %17, %cst_14 {dimension_numbers = #tpu.dot_dimension_numbers<[1], [0], [0], [1], [0, 0, 1, 1], [], []>} : vector<16x128xf32>, vector<128x128xf32>, vector<16x128xf32> -> vector<16x128xf32>
    %c0_15 = arith.constant 0 : index
    %c0_16 = arith.constant 0 : index
    %19 = vector.load %arg7[%c0_15, %c0_16] : memref<16x128xf32, #tpu.memory_space<vmem>>, vector<16x128xf32>
    tpu.vector_store %arg7[%c0_15, %c0_16], %18 {strides = array<i32>} : memref<16x128xf32, #tpu.memory_space<vmem>>, vector<16x128xf32>,
    return
  }
  func.func @transform_0(%arg0: i32) -> (i32, i32) {
    %c0_i32 = arith.constant 0 : i32
    %c0_i32_0 = arith.constant 0 : i32
    return %arg0, %c0_i32 : i32, i32
  }
  func.func @transform_1(%arg0: i32) -> (i32, i32) {
    %c0_i32 = arith.constant 0 : i32
    %c0_i32_0 = arith.constant 0 : i32
    return %arg0, %c0_i32 : i32, i32
  }
  func.func @transform_2(%arg0: i32) -> (i32, i32) {
    %c0_i32 = arith.constant 0 : i32
    %c0_i32_0 = arith.constant 0 : i32
    %c0_i32_1 = arith.constant 0 : i32
    return %c0_i32, %c0_i32_0 : i32, i32
  }
  func.func @transform_3(%arg0: i32) -> (i32, i32) {
    %c0_i32 = arith.constant 0 : i32
    %c0_i32_0 = arith.constant 0 : i32
    %c0_i32_1 = arith.constant 0 : i32
    return %c0_i32, %c0_i32_0 : i32, i32
  }
  func.func @transform_4(%arg0: i32) -> (i32, i32) {
    %c0_i32 = arith.constant 0 : i32
    %c0_i32_0 = arith.constant 0 : i32
    %c0_i32_1 = arith.constant 0 : i32
    return %c0_i32, %c0_i32_0 : i32, i32
  }
  func.func @transform_5(%arg0: i32) -> (i32, i32) {
    %c0_i32 = arith.constant 0 : i32
    %c0_i32_0 = arith.constant 0 : i32
    %c0_i32_1 = arith.constant 0 : i32
    return %c0_i32, %c0_i32_0 : i32, i32
  }
  func.func @transform_6(%arg0: i32) -> (i32, i32) {
    %c0_i32 = arith.constant 0 : i32
    %c0_i32_0 = arith.constant 0 : i32
    return %arg0, %c0_i32 : i32, i32
  }
}

</mosaic_0001>

<bundles_post_ra>
// kernel: tpu_custom_call.1
= control target key start
LH: loop header
LB: loop body
LE: loop exit
PB: predicated region body
PF: predicated region fallthrough
CT: control target
= control target key end

     0   :  { %11 = vsyncpa [#allocation3], 0  ;;  %s2129_s0 = inlined_call_operand.hbm [shape: bf16[16,256], index: 0, kind: input, shape index: {}]   ;;  %s2130_s1 = inlined_call_operand.hbm [shape: bf16[16,256], index: 1, kind: input, shape index: {}]   ;;  %s2131_s2 = inlined_call_operand.hbm [shape: bf16[256,512], index: 2, kind: input, shape index: {}]   ;;  %s2132_s3 = inlined_call_operand.hbm [shape: bf16[256,512], index: 3, kind: input, shape index: {}]   ;;  %s2133_s4 = inlined_call_operand.hbm [shape: f32[256,128], index: 4, kind: input, shape index: {}]   ;;  %s2134_s5 = inlined_call_operand.hbm [shape: f32[128,128], index: 5, kind: input, shape index: {}]   ;;  %s2135_s6 = inlined_call_operand.hbm [shape: f32[16,128], index: 6, kind: output, shape index: {}]  }
   0x1   :  { %12 = vsyncpa [#allocation6], 0 }
   0x2   :  { %13 = vsyncpa [#allocation9], 0 }
   0x3   :  { %14 = vsyncpa [#allocation12], 0 }
   0x4   :  { %15 = vsyncpa [#allocation4], 0  ;;  %s1978_s21 = smov [#allocation5]   ;;  %s1814_s25 = scalar_lea.hbm %s2130_s1, 256 }
   0x5   :  { %s33_s22 = sshll.u32 %s1978_s21, 4  ;;  %p1815_p0 = scmp.ne.s32.totalorder %s2130_s1, %s1814_s25  ;;  %s34_s22 = int_to_ptr.vmem [resolvable:$true] %s33_s22 }
   0x6   :  { %p1818_p1 = scmp.lt.u32.totalorder %s1814_s25, %s2130_s1 }
   0x8   :  { %p1820_p2 = pnand %p1818_p1, %p1815_p0 }
   0xa   :  { %1823 = shalt.err (!%p1820_p2)
}
   0xb   :  { %s1824_s30 = scalar_lea.vmem %s34_s22, 256  ;;  %p1829_p4 = scmp.lt.s32.totalorder %s34_s22, %s34_s22 }
   0xc   :  { %p1825_p3 = scmp.ne.s32.totalorder %s34_s22, %s1824_s30  ;;  %p1830_p5 = scmp.lt.s32.totalorder %s1824_s30, %s1824_s30 }
   0xe   :  { %p1831_p6 = por %p1830_p5, %p1829_p4 }
  0x10   :  { %p1832_p7 = pnand %p1831_p6, %p1825_p3 }
  0x12   :  { %1835 = shalt.err (!%p1832_p7)
}
  0x13   :  { %s1979_s7 = smov 128   ;;  %s1980_s8 = smov 8  }
  0x14   :  { %39 = dma.hbm_to_vmem [thread:$0]  %s2130_s1, 256, %s34_s22, [#allocation6], %s1979_s7, %s1979_s7, %s1980_s8  }
  0x15   :  { %s1981_s11 = smov [#allocation8]   ;;  %s1982_s13 = smov [#allocation2]  }
  0x16   :  { %s57_s12 = sshll.u32 %s1981_s11, 4  ;;  %s21_s14 = sshll.u32 %s1982_s13, 4  ;;  %s58_s12 = int_to_ptr.vmem [resolvable:$true] %s57_s12  ;;  %s22_s14 = int_to_ptr.vmem [resolvable:$true] %s21_s14 }
  0x17   :  { %s1836_s17 = scalar_lea.hbm %s2132_s3, 8192 }
  0x18   :  { %p1837_p8 = scmp.ne.s32.totalorder %s2132_s3, %s1836_s17  ;;  %p1840_p9 = scmp.lt.u32.totalorder %s1836_s17, %s2132_s3 }
  0x1a   :  { %p1842_p10 = pnand %p1840_p9, %p1837_p8 }
  0x1c   :  { %1845 = shalt.err (!%p1842_p10)
}
  0x1d   :  { %s1846_s1 = scalar_lea.vmem %s58_s12, 8192  ;;  %p1851_p12 = scmp.lt.s32.totalorder %s58_s12, %s58_s12 }
  0x1e   :  { %p1847_p11 = scmp.ne.s32.totalorder %s58_s12, %s1846_s1  ;;  %p1852_p13 = scmp.lt.s32.totalorder %s1846_s1, %s1846_s1 }
  0x20   :  { %p1853_p0 = por %p1852_p13, %p1851_p12 }
  0x22   :  { %p1854_p1 = pnand %p1853_p0, %p1847_p11 }
  0x24   :  { %1857 = shalt.err (!%p1854_p1)
}
  0x25   :  { %s1983_s22 = smov 256   ;;  %s1984_s23 = smov 16  }
  0x26   :  { %63 = dma.hbm_to_vmem [thread:$0]  %s2132_s3, 8192, %s58_s12, [#allocation9], %s1983_s22, %s1983_s22, %s1984_s23  }
  0x27   :  { %s1858_s28 = scalar_lea.hbm %s2129_s0, 256 }
  0x28   :  { %p1859_p2 = scmp.ne.s32.totalorder %s2129_s0, %s1858_s28  ;;  %p1862_p3 = scmp.lt.u32.totalorder %s1858_s28, %s2129_s0 }
  0x2a   :  { %p1864_p4 = pnand %p1862_p3, %p1859_p2 }
  0x2c   :  { %1867 = shalt.err (!%p1864_p4)
}
  0x2d   :  { %s1868_s11 = scalar_lea.vmem %s22_s14, 256  ;;  %p1873_p6 = scmp.lt.s32.totalorder %s22_s14, %s22_s14 }
  0x2e   :  { %p1869_p5 = scmp.ne.s32.totalorder %s22_s14, %s1868_s11  ;;  %p1874_p7 = scmp.lt.s32.totalorder %s1868_s11, %s1868_s11 }
  0x30   :  { %p1875_p8 = por %p1874_p7, %p1873_p6 }
  0x32   :  { %p1876_p9 = pnand %p1875_p8, %p1869_p5 }
  0x34   :  { %1879 = shalt.err (!%p1876_p9)
}
  0x35   :  { %27 = dma.hbm_to_vmem [thread:$0]  %s2129_s0, 256, %s22_s14, [#allocation3], %s1979_s7, %s1979_s7, %s1980_s8  }
  0x36   :  { %s1985_s13 = smov [#allocation7]   ;;  %s1986_s16 = smov [#allocation10]  }
  0x37   :  { %s45_s15 = sshll.u32 %s1985_s13, 4  ;;  %s69_s17 = sshll.u32 %s1986_s16, 4  ;;  %s46_s15 = int_to_ptr.vmem [resolvable:$true] %s45_s15  ;;  %s70_s17 = int_to_ptr.vmem [resolvable:$true] %s69_s17 }
  0x38   :  { %s1880_s20 = scalar_lea.hbm %s2131_s2, 8192 }
  0x39   :  { %p1881_p10 = scmp.ne.s32.totalorder %s2131_s2, %s1880_s20  ;;  %p1884_p11 = scmp.lt.u32.totalorder %s1880_s20, %s2131_s2 }
  0x3b   :  { %p1886_p12 = pnand %p1884_p11, %p1881_p10 }
  0x3d   :  { %1889 = shalt.err (!%p1886_p12)
}
  0x3e   :  { %s1890_s0 = scalar_lea.vmem %s46_s15, 8192  ;;  %p1895_p0 = scmp.lt.s32.totalorder %s46_s15, %s46_s15 }
  0x3f   :  { %p1891_p13 = scmp.ne.s32.totalorder %s46_s15, %s1890_s0  ;;  %p1896_p1 = scmp.lt.s32.totalorder %s1890_s0, %s1890_s0 }
  0x41   :  { %p1897_p2 = por %p1896_p1, %p1895_p0 }
  0x43   :  { %p1898_p3 = pnand %p1897_p2, %p1891_p13 }
  0x45   :  { %1901 = shalt.err (!%p1898_p3)
}
  0x46   :  { %51 = dma.hbm_to_vmem [thread:$0]  %s2131_s2, 8192, %s46_s15, [#allocation6], %s1983_s22, %s1983_s22, %s1984_s23  }
  0x47   :  { %s1902_s29 = scalar_lea.hbm %s2133_s4, 4096 }
  0x48   :  { %p1903_p4 = scmp.ne.s32.totalorder %s2133_s4, %s1902_s29  ;;  %p1906_p5 = scmp.lt.u32.totalorder %s1902_s29, %s2133_s4 }
  0x4a   :  { %p1908_p6 = pnand %p1906_p5, %p1903_p4 }
  0x4c   :  { %1911 = shalt.err (!%p1908_p6)
}
  0x4d   :  { %s1912_s3 = scalar_lea.vmem %s70_s17, 4096  ;;  %p1917_p8 = scmp.lt.s32.totalorder %s70_s17, %s70_s17 }
  0x4e   :  { %p1913_p7 = scmp.ne.s32.totalorder %s70_s17, %s1912_s3  ;;  %p1918_p9 = scmp.lt.s32.totalorder %s1912_s3, %s1912_s3 }
  0x50   :  { %p1919_p10 = por %p1918_p9, %p1917_p8 }
  0x52   :  { %p1920_p11 = pnand %p1919_p10, %p1913_p7 }
  0x54   :  { %1923 = shalt.err (!%p1920_p11)
}
  0x55   :  { %75 = dma.hbm_to_vmem [thread:$0]  %s2133_s4, 4096, %s70_s17, [#allocation9], %s1979_s7, %s1979_s7, %s1980_s8  }
  0x56   :  { %s1987_s23 = smov [#allocation11]   ;;  %s1924_s16 = scalar_lea.hbm %s2134_s5, 2048 }
  0x57   :  { %s81_s12 = sshll.u32 %s1987_s23, 4  ;;  %p1925_p12 = scmp.ne.s32.totalorder %s2134_s5, %s1924_s16  ;;  %s82_s12 = int_to_ptr.vmem [resolvable:$true] %s81_s12 }
  0x58   :  { %p1928_p13 = scmp.lt.u32.totalorder %s1924_s16, %s2134_s5 }
  0x5a   :  { %p1930_p0 = pnand %p1928_p13, %p1925_p12 }
  0x5c   :  { %1933 = shalt.err (!%p1930_p0)
}
  0x5d   :  { %s1934_s1 = scalar_lea.vmem %s82_s12, 2048  ;;  %p1939_p2 = scmp.lt.s32.totalorder %s82_s12, %s82_s12 }
  0x5e   :  { %p1935_p1 = scmp.ne.s32.totalorder %s82_s12, %s1934_s1  ;;  %p1940_p3 = scmp.lt.s32.totalorder %s1934_s1, %s1934_s1 }
  0x60   :  { %p1941_p4 = por %p1940_p3, %p1939_p2 }
  0x62   :  { %p1942_p5 = pnand %p1941_p4, %p1935_p1 }
  0x64   :  { %1945 = shalt.err (!%p1942_p5)
}
  0x65   :  { %87 = dma.hbm_to_vmem [thread:$0]  %s2134_s5, 2048, %s82_s12, [#allocation12], %s1979_s7, %s1979_s7, %s1980_s8  }
  0x66   :  { %1968 = dma.done.wait [#allocation3], 256  }
  0x67   :  { %1969 = vsyncadd [#allocation3], 4294967040 }
  0x68   :  { %1970 = dma.done.wait [#allocation6], 8448  }
  0x69   :  { %1971 = vsyncadd [#allocation6], 4294958848 }
  0x6a   :  { %1972 = dma.done.wait [#allocation9], 12288  }
  0x6b   :  { %1973 = vsyncadd [#allocation9], 4294955008 }
  0x6c   :  { %1974 = dma.done.wait [#allocation12], 2048  }
  0x6d   :  { %1975 = vsyncadd [#allocation12], 4294965248  ;;  %v1612_v0 = vld [vmem:[#allocation8 + $0x4] ss:$16 sps:$4 sm:$0xff]   ;;  %v1614_v1 = vld [vmem:[#allocation8 + $0xc] ss:$16 sps:$4 sm:$0xff]  }
  0x6e   :  { %568 = vmatprep.subr.bf16.mxu0 %v1612_v0  ;;  %v1616_v2 = vld [vmem:[#allocation8] ss:$16 sps:$4 sm:$0xff]   ;;  %v1617_v3 = vld [vmem:[#allocation8 + $0x8] ss:$16 sps:$4 sm:$0xff]   ;;  %611 = vmatprep.subr.bf16.mxu1 %v1614_v1  ;;  %v1618_v4 = vld [vmem:[#allocation8 + $0x24] ss:$16 sps:$4 sm:$0xff]  }
  0x6f   :  { %569 = vmatpush1.bf16.msra.mxu0 %v1616_v2  ;;  %612 = vmatpush1.bf16.msra.mxu1 %v1617_v3  ;;  %v1620_v5 = vld [vmem:[#allocation8 + $0x2c] ss:$16 sps:$4 sm:$0xff]   ;;  %v1622_v6 = vld [vmem:[#allocation8 + $0x20] ss:$16 sps:$4 sm:$0xff]   ;;  %v1623_v7 = vld [vmem:[#allocation8 + $0x28] ss:$16 sps:$4 sm:$0xff]  }
  0x70   :  { %570 = vmatprep.subr.bf16.mxu0 %v1618_v4  ;;  %613 = vmatprep.subr.bf16.mxu1 %v1620_v5  ;;  %v1624_v8 = vld [vmem:[#allocation8 + $0x44] ss:$16 sps:$4 sm:$0xff]   ;;  %v1626_v9 = vld [vmem:[#allocation8 + $0x4c] ss:$16 sps:$4 sm:$0xff]   ;;  %v1628_v10 = vld [vmem:[#allocation8 + $0x40] ss:$16 sps:$4 sm:$0xff]  }
  0x71   :  { %v1629_v11 = vld [vmem:[#allocation8 + $0x48] ss:$16 sps:$4 sm:$0xff]   ;;  %v1630_v12 = vld [vmem:[#allocation8 + $0x64] ss:$16 sps:$4 sm:$0xff]   ;;  %v1632_v13 = vld [vmem:[#allocation8 + $0x6c] ss:$16 sps:$4 sm:$0xff]  }
  0x72   :  { %v1634_v14 = vld [vmem:[#allocation8 + $0x60] ss:$16 sps:$4 sm:$0xff]   ;;  %v1635_v15 = vld [vmem:[#allocation8 + $0x68] ss:$16 sps:$4 sm:$0xff]   ;;  %v1636_v16 = vld [vmem:[#allocation8 + $0x84] ss:$16 sps:$4 sm:$0xff]  }
  0x73   :  { %571 = vmatpush1.bf16.msra.mxu0 %v1622_v6  ;;  %614 = vmatpush1.bf16.msra.mxu1 %v1623_v7  ;;  %v1638_v17 = vld [vmem:[#allocation8 + $0x8c] ss:$16 sps:$4 sm:$0xff]   ;;  %v1640_v18 = vld [vmem:[#allocation8 + $0x80] ss:$16 sps:$4 sm:$0xff]   ;;  %v1641_v19 = vld [vmem:[#allocation8 + $0x88] ss:$16 sps:$4 sm:$0xff]  }
  0x74   :  { %572 = vmatprep.subr.bf16.mxu0 %v1624_v8  ;;  %615 = vmatprep.subr.bf16.mxu1 %v1626_v9  ;;  %v1642_v20 = vld [vmem:[#allocation8 + $0xa4] ss:$16 sps:$4 sm:$0xff]   ;;  %v1644_v21 = vld [vmem:[#allocation8 + $0xac] ss:$16 sps:$4 sm:$0xff]   ;;  %v1646_v22 = vld [vmem:[#allocation8 + $0xa0] ss:$16 sps:$4 sm:$0xff]  }
  0x75   :  { %v1647_v23 = vld [vmem:[#allocation8 + $0xa8] ss:$16 sps:$4 sm:$0xff]   ;;  %v1648_v24 = vld [vmem:[#allocation8 + $0xc4] ss:$16 sps:$4 sm:$0xff]   ;;  %v1650_v25 = vld [vmem:[#allocation8 + $0xcc] ss:$16 sps:$4 sm:$0xff]  }
  0x76   :  { %v1652_v26 = vld [vmem:[#allocation8 + $0xc0] ss:$16 sps:$4 sm:$0xff]   ;;  %v1653_v27 = vld [vmem:[#allocation8 + $0xc8] ss:$16 sps:$4 sm:$0xff]   ;;  %v1654_v28 = vld [vmem:[#allocation8 + $0xe4] ss:$16 sps:$4 sm:$0xff]  }
  0x77   :  { %573 = vmatpush1.bf16.msra.mxu0 %v1628_v10  ;;  %616 = vmatpush1.bf16.msra.mxu1 %v1629_v11  ;;  %v1656_v29 = vld [vmem:[#allocation8 + $0xec] ss:$16 sps:$4 sm:$0xff]   ;;  %v1658_v30 = vld [vmem:[#allocation8 + $0xe0] ss:$16 sps:$4 sm:$0xff]   ;;  %v1659_v31 = vld [vmem:[#allocation8 + $0xe8] ss:$16 sps:$4 sm:$0xff]  }
  0x78   :  { %574 = vmatprep.subr.bf16.mxu0 %v1630_v12  ;;  %617 = vmatprep.subr.bf16.mxu1 %v1632_v13  ;;  %v1660_v32 = vld [vmem:[#allocation8 + $0x104] ss:$16 sps:$4 sm:$0xff]   ;;  %v1662_v33 = vld [vmem:[#allocation8 + $0x10c] ss:$16 sps:$4 sm:$0xff]   ;;  %v1664_v34 = vld [vmem:[#allocation8 + $0x100] ss:$16 sps:$4 sm:$0xff]  }
  0x79   :  { %v1665_v35 = vld [vmem:[#allocation8 + $0x108] ss:$16 sps:$4 sm:$0xff]   ;;  %v1666_v36 = vld [vmem:[#allocation8 + $0x124] ss:$16 sps:$4 sm:$0xff]   ;;  %v1668_v37 = vld [vmem:[#allocation8 + $0x12c] ss:$16 sps:$4 sm:$0xff]  }
  0x7a   :  { %v1670_v38 = vld [vmem:[#allocation8 + $0x120] ss:$16 sps:$4 sm:$0xff]   ;;  %v1671_v39 = vld [vmem:[#allocation8 + $0x128] ss:$16 sps:$4 sm:$0xff]   ;;  %v1672_v40 = vld [vmem:[#allocation8 + $0x144] ss:$16 sps:$4 sm:$0xff]  }
  0x7b   :  { %575 = vmatpush1.bf16.msra.mxu0 %v1634_v14  ;;  %618 = vmatpush1.bf16.msra.mxu1 %v1635_v15  ;;  %v1674_v41 = vld [vmem:[#allocation8 + $0x14c] ss:$16 sps:$4 sm:$0xff]   ;;  %v1676_v42 = vld [vmem:[#allocation8 + $0x140] ss:$16 sps:$4 sm:$0xff]   ;;  %v1677_v43 = vld [vmem:[#allocation8 + $0x148] ss:$16 sps:$4 sm:$0xff]  }
  0x7c   :  { %576 = vmatprep.subr.bf16.mxu0 %v1636_v16  ;;  %619 = vmatprep.subr.bf16.mxu1 %v1638_v17  ;;  %v1678_v44 = vld [vmem:[#allocation8 + $0x164] ss:$16 sps:$4 sm:$0xff]   ;;  %v1680_v45 = vld [vmem:[#allocation8 + $0x16c] ss:$16 sps:$4 sm:$0xff]   ;;  %v1682_v46 = vld [vmem:[#allocation8 + $0x160] ss:$16 sps:$4 sm:$0xff]  }
  0x7d   :  { %v1683_v47 = vld [vmem:[#allocation8 + $0x168] ss:$16 sps:$4 sm:$0xff]   ;;  %v1710_v48 = vld [vmem:[#allocation5 + $0x4] ss:$8 sps:$4 sm:$0xff]   ;;  %v1688_v51 = vld [vmem:[#allocation8 + $0x180] ss:$16 sps:$4 sm:$0xff]  }
  0x7e   :  { %v1684_v49 = vld [vmem:[#allocation8 + $0x184] ss:$16 sps:$4 sm:$0xff]   ;;  %v1686_v50 = vld [vmem:[#allocation8 + $0x18c] ss:$16 sps:$4 sm:$0xff]   ;;  %600 = vmatprep.mubr.bf16.mxu0 %v1710_v48  ;;  %643 = vmatprep.mubr.bf16.mxu1 %v1710_v48  ;;  %v1689_v52 = vld [vmem:[#allocation8 + $0x188] ss:$16 sps:$4 sm:$0xff]  }
  0x7f   :  { %577 = vmatpush1.bf16.msra.mxu0 %v1640_v18  ;;  %620 = vmatpush1.bf16.msra.mxu1 %v1641_v19  ;;  %v1690_v53 = vld [vmem:[#allocation8 + $0x1a4] ss:$16 sps:$4 sm:$0xff]   ;;  %v1692_v54 = vld [vmem:[#allocation8 + $0x1ac] ss:$16 sps:$4 sm:$0xff]   ;;  %v1694_v55 = vld [vmem:[#allocation8 + $0x1a0] ss:$16 sps:$4 sm:$0xff]  }
  0x80   :  { %578 = vmatprep.subr.bf16.mxu0 %v1642_v20  ;;  %621 = vmatprep.subr.bf16.mxu1 %v1644_v21  ;;  %v1695_v56 = vld [vmem:[#allocation8 + $0x1a8] ss:$16 sps:$4 sm:$0xff]   ;;  %v1696_v57 = vld [vmem:[#allocation8 + $0x1c4] ss:$16 sps:$4 sm:$0xff]   ;;  %v1698_v58 = vld [vmem:[#allocation8 + $0x1cc] ss:$16 sps:$4 sm:$0xff]  }
  0x81   :  { %v1700_v59 = vld [vmem:[#allocation8 + $0x1c0] ss:$16 sps:$4 sm:$0xff]   ;;  %v1701_v60 = vld [vmem:[#allocation8 + $0x1c8] ss:$16 sps:$4 sm:$0xff]   ;;  %v1702_v61 = vld [vmem:[#allocation8 + $0x1e4] ss:$16 sps:$4 sm:$0xff]  }
  0x82   :  { %v1704_v62 = vld [vmem:[#allocation8 + $0x1ec] ss:$16 sps:$4 sm:$0xff]   ;;  %v1706_v63 = vld [vmem:[#allocation8 + $0x1e0] ss:$16 sps:$4 sm:$0xff]   ;;  %v1707_v0 = vld [vmem:[#allocation8 + $0x1e8] ss:$16 sps:$4 sm:$0xff]  }
  0x83   :  { %579 = vmatpush1.bf16.msra.mxu0 %v1646_v22  ;;  %622 = vmatpush1.bf16.msra.mxu1 %v1647_v23  ;;  %v1713_v1 = vld [vmem:[#allocation7 + $0x4] ss:$16 sps:$4 sm:$0xff]   ;;  %v1716_v2 = vld [vmem:[#allocation7 + $0xc] ss:$16 sps:$4 sm:$0xff]   ;;  %v1708_v3 = vld [vmem:[#allocation5] ss:$8 sps:$4 sm:$0xff]  }
  0x84   :  { %580 = vmatprep.subr.bf16.mxu0 %v1648_v24  ;;  %623 = vmatprep.subr.bf16.mxu1 %v1650_v25  ;;  %v1711_v4 = vld [vmem:[#allocation7] ss:$16 sps:$4 sm:$0xff]   ;;  %v1714_v5 = vld [vmem:[#allocation7 + $0x8] ss:$16 sps:$4 sm:$0xff]   ;;  %v1719_v6 = vld [vmem:[#allocation7 + $0x24] ss:$16 sps:$4 sm:$0xff]  }
  0x85   :  { %v1722_v7 = vld [vmem:[#allocation7 + $0x2c] ss:$16 sps:$4 sm:$0xff]   ;;  %v1717_v8 = vld [vmem:[#allocation7 + $0x20] ss:$16 sps:$4 sm:$0xff]   ;;  %v1720_v9 = vld [vmem:[#allocation7 + $0x28] ss:$16 sps:$4 sm:$0xff]  }
  0x86   :  { %v1725_v10 = vld [vmem:[#allocation7 + $0x44] ss:$16 sps:$4 sm:$0xff]   ;;  %v1728_v11 = vld [vmem:[#allocation7 + $0x4c] ss:$16 sps:$4 sm:$0xff]   ;;  %v1723_v12 = vld [vmem:[#allocation7 + $0x40] ss:$16 sps:$4 sm:$0xff]  }
  0x87   :  { %581 = vmatpush1.bf16.msra.mxu0 %v1652_v26  ;;  %624 = vmatpush1.bf16.msra.mxu1 %v1653_v27  ;;  %v1726_v13 = vld [vmem:[#allocation7 + $0x48] ss:$16 sps:$4 sm:$0xff]   ;;  %v1731_v14 = vld [vmem:[#allocation7 + $0x64] ss:$16 sps:$4 sm:$0xff]   ;;  %v1734_v15 = vld [vmem:[#allocation7 + $0x6c] ss:$16 sps:$4 sm:$0xff]  }
  0x88   :  { %582 = vmatprep.subr.bf16.mxu0 %v1654_v28  ;;  %625 = vmatprep.subr.bf16.mxu1 %v1656_v29  ;;  %v1729_v16 = vld [vmem:[#allocation7 + $0x60] ss:$16 sps:$4 sm:$0xff]   ;;  %v1732_v17 = vld [vmem:[#allocation7 + $0x68] ss:$16 sps:$4 sm:$0xff]   ;;  %v1737_v18 = vld [vmem:[#allocation7 + $0x84] ss:$16 sps:$4 sm:$0xff]  }
  0x89   :  { %v1740_v19 = vld [vmem:[#allocation7 + $0x8c] ss:$16 sps:$4 sm:$0xff]   ;;  %v1735_v20 = vld [vmem:[#allocation7 + $0x80] ss:$16 sps:$4 sm:$0xff]   ;;  %v1738_v21 = vld [vmem:[#allocation7 + $0x88] ss:$16 sps:$4 sm:$0xff]  }
  0x8a   :  { %v1743_v22 = vld [vmem:[#allocation7 + $0xa4] ss:$16 sps:$4 sm:$0xff]   ;;  %v1746_v23 = vld [vmem:[#allocation7 + $0xac] ss:$16 sps:$4 sm:$0xff]   ;;  %v1741_v24 = vld [vmem:[#allocation7 + $0xa0] ss:$16 sps:$4 sm:$0xff]  }
  0x8b   :  { %583 = vmatpush1.bf16.msra.mxu0 %v1658_v30  ;;  %626 = vmatpush1.bf16.msra.mxu1 %v1659_v31  ;;  %v1744_v25 = vld [vmem:[#allocation7 + $0xa8] ss:$16 sps:$4 sm:$0xff]   ;;  %v1749_v26 = vld [vmem:[#allocation7 + $0xc4] ss:$16 sps:$4 sm:$0xff]   ;;  %v1752_v27 = vld [vmem:[#allocation7 + $0xcc] ss:$16 sps:$4 sm:$0xff]  }
  0x8c   :  { %584 = vmatprep.subr.bf16.mxu0 %v1660_v32  ;;  %627 = vmatprep.subr.bf16.mxu1 %v1662_v33  ;;  %v1809_v28 = vld [vmem:[#allocation2 + $0x4] ss:$8 sps:$4 sm:$0xff]   ;;  %v1747_v29 = vld [vmem:[#allocation7 + $0xc0] ss:$16 sps:$4 sm:$0xff]   ;;  %v1750_v30 = vld [vmem:[#allocation7 + $0xc8] ss:$16 sps:$4 sm:$0xff]  }
  0x8d   :  { %v1755_v31 = vld [vmem:[#allocation7 + $0xe4] ss:$16 sps:$4 sm:$0xff]   ;;  %v1758_v32 = vld [vmem:[#allocation7 + $0xec] ss:$16 sps:$4 sm:$0xff]   ;;  %v1753_v33 = vld [vmem:[#allocation7 + $0xe0] ss:$16 sps:$4 sm:$0xff]  }
  0x8e   :  { %v1782_v48 = vld [vmem:[#allocation7 + $0x16c] ss:$16 sps:$4 sm:$0xff]   ;;  %s1988_s5 = smov [#allocation13]  }
  0x8f   :  { %585 = vmatpush1.bf16.msra.mxu0 %v1664_v34  ;;  %628 = vmatpush1.bf16.msra.mxu1 %v1665_v35  ;;  %v1756_v34 = vld [vmem:[#allocation7 + $0xe8] ss:$16 sps:$4 sm:$0xff]   ;;  %v1761_v35 = vld [vmem:[#allocation7 + $0x104] ss:$16 sps:$4 sm:$0xff]   ;;  %s1291_s24 = sshll.u32 %s1988_s5, 4  ;;  %s1292_s24 = int_to_ptr.vmem [resolvable:$true] %s1291_s24 }
  0x90   :  { %586 = vmatprep.subr.bf16.mxu0 %v1666_v36  ;;  %629 = vmatprep.subr.bf16.mxu1 %v1668_v37  ;;  %v1764_v36 = vld [vmem:[#allocation7 + $0x10c] ss:$16 sps:$4 sm:$0xff]   ;;  %v1759_v37 = vld [vmem:[#allocation7 + $0x100] ss:$16 sps:$4 sm:$0xff]   ;;  %s1946_s25 = scalar_lea.vmem %s1292_s24, 256  ;;  %p1951_p7 = scmp.lt.s32.totalorder %s1292_s24, %s1292_s24 }
  0x91   :  { %p1947_p6 = scmp.ne.s32.totalorder %s1292_s24, %s1946_s25  ;;  %p1952_p8 = scmp.lt.s32.totalorder %s1946_s25, %s1946_s25 }
  0x93   :  { %587 = vmatpush1.bf16.msra.mxu0 %v1670_v38  ;;  %630 = vmatpush1.bf16.msra.mxu1 %v1671_v39  ;;  %v1762_v38 = vld [vmem:[#allocation7 + $0x108] ss:$16 sps:$4 sm:$0xff]   ;;  %v1767_v39 = vld [vmem:[#allocation7 + $0x124] ss:$16 sps:$4 sm:$0xff]   ;;  %p1953_p9 = por %p1952_p8, %p1951_p7 }
  0x94   :  { %588 = vmatprep.subr.bf16.mxu0 %v1672_v40  ;;  %631 = vmatprep.subr.bf16.mxu1 %v1674_v41  ;;  %v1770_v40 = vld [vmem:[#allocation7 + $0x12c] ss:$16 sps:$4 sm:$0xff]   ;;  %v1765_v41 = vld [vmem:[#allocation7 + $0x120] ss:$16 sps:$4 sm:$0xff]  }
  0x95   :  { %p1954_p10 = pnand %p1953_p9, %p1947_p6 }
  0x97   :  { %589 = vmatpush1.bf16.msra.mxu0 %v1676_v42  ;;  %632 = vmatpush1.bf16.msra.mxu1 %v1677_v43  ;;  %v1768_v42 = vld [vmem:[#allocation7 + $0x128] ss:$16 sps:$4 sm:$0xff]   ;;  %v1773_v43 = vld [vmem:[#allocation7 + $0x144] ss:$16 sps:$4 sm:$0xff]  }
  0x98   :  { %590 = vmatprep.subr.bf16.mxu0 %v1678_v44  ;;  %633 = vmatprep.subr.bf16.mxu1 %v1680_v45  ;;  %v1776_v44 = vld [vmem:[#allocation7 + $0x14c] ss:$16 sps:$4 sm:$0xff]   ;;  %v1771_v45 = vld [vmem:[#allocation7 + $0x140] ss:$16 sps:$4 sm:$0xff]  }
  0x9b   :  { %591 = vmatpush1.bf16.msra.mxu0 %v1682_v46  ;;  %634 = vmatpush1.bf16.msra.mxu1 %v1683_v47  ;;  %v1774_v46 = vld [vmem:[#allocation7 + $0x148] ss:$16 sps:$4 sm:$0xff]   ;;  %v1779_v47 = vld [vmem:[#allocation7 + $0x164] ss:$16 sps:$4 sm:$0xff]  }
  0x9c   :  { %592 = vmatprep.subr.bf16.mxu0 %v1684_v49  ;;  %635 = vmatprep.subr.bf16.mxu1 %v1686_v50  ;;  %v1777_v49 = vld [vmem:[#allocation7 + $0x160] ss:$16 sps:$4 sm:$0xff]   ;;  %v1780_v50 = vld [vmem:[#allocation7 + $0x168] ss:$16 sps:$4 sm:$0xff]  }
  0x9f   :  { %593 = vmatpush1.bf16.msra.mxu0 %v1688_v51  ;;  %636 = vmatpush1.bf16.msra.mxu1 %v1689_v52  ;;  %v1785_v51 = vld [vmem:[#allocation7 + $0x184] ss:$16 sps:$4 sm:$0xff]   ;;  %v1788_v52 = vld [vmem:[#allocation7 + $0x18c] ss:$16 sps:$4 sm:$0xff]  }
  0xa0   :  { %594 = vmatprep.subr.bf16.mxu0 %v1690_v53  ;;  %637 = vmatprep.subr.bf16.mxu1 %v1692_v54  ;;  %v1783_v53 = vld [vmem:[#allocation7 + $0x180] ss:$16 sps:$4 sm:$0xff]   ;;  %v1786_v54 = vld [vmem:[#allocation7 + $0x188] ss:$16 sps:$4 sm:$0xff]  }
  0xa3   :  { %595 = vmatpush1.bf16.msra.mxu0 %v1694_v55  ;;  %638 = vmatpush1.bf16.msra.mxu1 %v1695_v56  ;;  %v1791_v55 = vld [vmem:[#allocation7 + $0x1a4] ss:$16 sps:$4 sm:$0xff]   ;;  %v1794_v56 = vld [vmem:[#allocation7 + $0x1ac] ss:$16 sps:$4 sm:$0xff]  }
  0xa4   :  { %596 = vmatprep.subr.bf16.mxu0 %v1696_v57  ;;  %639 = vmatprep.subr.bf16.mxu1 %v1698_v58  ;;  %v1789_v57 = vld [vmem:[#allocation7 + $0x1a0] ss:$16 sps:$4 sm:$0xff]   ;;  %v1792_v58 = vld [vmem:[#allocation7 + $0x1a8] ss:$16 sps:$4 sm:$0xff]  }
  0xa7   :  { %597 = vmatpush1.bf16.msra.mxu0 %v1700_v59  ;;  %640 = vmatpush1.bf16.msra.mxu1 %v1701_v60  ;;  %v1797_v59 = vld [vmem:[#allocation7 + $0x1c4] ss:$16 sps:$4 sm:$0xff]   ;;  %v1800_v60 = vld [vmem:[#allocation7 + $0x1cc] ss:$16 sps:$4 sm:$0xff]  }
  0xa8   :  { %598 = vmatprep.subr.bf16.mxu0 %v1702_v61  ;;  %641 = vmatprep.subr.bf16.mxu1 %v1704_v62  ;;  %v1795_v61 = vld [vmem:[#allocation7 + $0x1c0] ss:$16 sps:$4 sm:$0xff]   ;;  %v1798_v62 = vld [vmem:[#allocation7 + $0x1c8] ss:$16 sps:$4 sm:$0xff]  }
  0xab   :  { %599 = vmatpush1.bf16.msra.mxu0 %v1706_v63  ;;  %642 = vmatpush1.bf16.msra.mxu1 %v1707_v0  ;;  %v1803_v63 = vld [vmem:[#allocation7 + $0x1e4] ss:$16 sps:$4 sm:$0xff]   ;;  %v1806_v0 = vld [vmem:[#allocation7 + $0x1ec] ss:$16 sps:$4 sm:$0xff]  }
  0xac   :  { %984 = vmatprep.subr.bf16.mxu0 %v1713_v1  ;;  %1027 = vmatprep.subr.bf16.mxu1 %v1716_v2  ;;  %v1098_v1 = vld [vmem:[#allocation10 + $0x80] sm:$0xff]  ;;  %v1099_v2 = vld [vmem:[#allocation10 + $0x88] sm:$0xff] }
  0xae   :  { %601 = vmatmul.mubr.bf16.vlgmr.msra.gmra.mrb[0].mxu0 %v1708_v3  ;;  %644 = vmatmul.mubr.bf16.vlgmr.msra.gmra.mrb[0].mxu1 %v1708_v3  ;;  %v1801_v3 = vld [vmem:[#allocation7 + $0x1e0] ss:$16 sps:$4 sm:$0xff]  }
  0xaf   :  { %985 = vmatpush1.bf16.msra.mxu0 %v1711_v4  ;;  %1028 = vmatpush1.bf16.msra.mxu1 %v1714_v5  ;;  %v1804_v4 = vld [vmem:[#allocation7 + $0x1e8] ss:$16 sps:$4 sm:$0xff]   ;;  %v1529_v5 = vpack.c.bf16 %v1099_v2, %v1098_v1 }
  0xb0   :  { %986 = vmatprep.subr.bf16.mxu0 %v1719_v6  ;;  %1029 = vmatprep.subr.bf16.mxu1 %v1722_v7  ;;  %v1082_v6 = vld [vmem:[#allocation10] sm:$0xff]  ;;  %v1083_v7 = vld [vmem:[#allocation10 + $0x8] sm:$0xff] }
  0xb1   :  { %1016 = vmatprep.mubr.bf16.mxu0 %v1809_v28  ;;  %1059 = vmatprep.mubr.bf16.mxu1 %v1809_v28  ;;  %v1107_v28 = vld [vmem:[#allocation10 + $0xc8] sm:$0xff] }
  0xb3   :  { %987 = vmatpush1.bf16.msra.mxu0 %v1717_v8  ;;  %1030 = vmatpush1.bf16.msra.mxu1 %v1720_v9  ;;  %v1100_v8 = vld [vmem:[#allocation10 + $0x90] sm:$0xff]  ;;  %v1101_v9 = vld [vmem:[#allocation10 + $0x98] sm:$0xff] }
  0xb4   :  { %988 = vmatprep.subr.bf16.mxu0 %v1725_v10  ;;  %1031 = vmatprep.subr.bf16.mxu1 %v1728_v11  ;;  %v1807_v10 = vld [vmem:[#allocation2] ss:$8 sps:$4 sm:$0xff]   ;;  %v1531_v11 = vpack.c.bf16 %v1083_v7, %v1082_v6 }
  0xb7   :  { %989 = vmatpush1.bf16.msra.mxu0 %v1723_v12  ;;  %1032 = vmatpush1.bf16.msra.mxu1 %v1726_v13  ;;  %v1533_v12 = vpack.c.bf16 %v1101_v9, %v1100_v8  ;;  %v1084_v13 = vld [vmem:[#allocation10 + $0x10] sm:$0xff] }
  0xb8   :  { %990 = vmatprep.subr.bf16.mxu0 %v1731_v14  ;;  %1033 = vmatprep.subr.bf16.mxu1 %v1734_v15  ;;  %v1085_v14 = vld [vmem:[#allocation10 + $0x18] sm:$0xff]  ;;  %v1102_v15 = vld [vmem:[#allocation10 + $0xa0] sm:$0xff] }
  0xbb   :  { %991 = vmatpush1.bf16.msra.mxu0 %v1729_v16  ;;  %1034 = vmatpush1.bf16.msra.mxu1 %v1732_v17  ;;  %v1103_v16 = vld [vmem:[#allocation10 + $0xa8] sm:$0xff]  ;;  %v1535_v17 = vpack.c.bf16 %v1085_v14, %v1084_v13 }
  0xbc   :  { %992 = vmatprep.subr.bf16.mxu0 %v1737_v18  ;;  %1035 = vmatprep.subr.bf16.mxu1 %v1740_v19  ;;  %v1537_v18 = vpack.c.bf16 %v1103_v16, %v1102_v15  ;;  %v1086_v19 = vld [vmem:[#allocation10 + $0x20] sm:$0xff] }
  0xbf   :  { %993 = vmatpush1.bf16.msra.mxu0 %v1735_v20  ;;  %1036 = vmatpush1.bf16.msra.mxu1 %v1738_v21  ;;  %v1087_v20 = vld [vmem:[#allocation10 + $0x28] sm:$0xff]  ;;  %v1104_v21 = vld [vmem:[#allocation10 + $0xb0] sm:$0xff] }
  0xc0   :  { %994 = vmatprep.subr.bf16.mxu0 %v1743_v22  ;;  %1037 = vmatprep.subr.bf16.mxu1 %v1746_v23  ;;  %v1105_v22 = vld [vmem:[#allocation10 + $0xb8] sm:$0xff]  ;;  %v1539_v23 = vpack.c.bf16 %v1087_v20, %v1086_v19  ;;  %v1201_v20 = vld [vmem:[#allocation11 + $0x40] sm:$0xff] }
  0xc3   :  { %995 = vmatpush1.bf16.msra.mxu0 %v1741_v24  ;;  %1038 = vmatpush1.bf16.msra.mxu1 %v1744_v25  ;;  %v1541_v24 = vpack.c.bf16 %v1105_v22, %v1104_v21  ;;  %v1088_v25 = vld [vmem:[#allocation10 + $0x30] sm:$0xff]  ;;  %v1202_v21 = vld [vmem:[#allocation11 + $0x48] sm:$0xff] }
  0xc4   :  { %996 = vmatprep.subr.bf16.mxu0 %v1749_v26  ;;  %1039 = vmatprep.subr.bf16.mxu1 %v1752_v27  ;;  %v1089_v26 = vld [vmem:[#allocation10 + $0x38] sm:$0xff]  ;;  %v1106_v27 = vld [vmem:[#allocation10 + $0xc0] sm:$0xff]  ;;  %v1577_v22 = vpack.c.bf16 %v1202_v21, %v1201_v20 }
  0xc7   :  { %997 = vmatpush1.bf16.msra.mxu0 %v1747_v29  ;;  %1040 = vmatpush1.bf16.msra.mxu1 %v1750_v30  ;;  %v1543_v29 = vpack.c.bf16 %v1089_v26, %v1088_v25  ;;  %v1545_v30 = vpack.c.bf16 %v1107_v28, %v1106_v27  ;;  %v1205_v26 = vld [vmem:[#allocation11 + $0x60] sm:$0xff]  ;;  %v1206_v27 = vld [vmem:[#allocation11 + $0x68] sm:$0xff] }
  0xc8   :  { %998 = vmatprep.subr.bf16.mxu0 %v1755_v31  ;;  %1041 = vmatprep.subr.bf16.mxu1 %v1758_v32  ;;  %v1090_v31 = vld [vmem:[#allocation10 + $0x40] sm:$0xff]  ;;  %v1091_v32 = vld [vmem:[#allocation10 + $0x48] sm:$0xff]  ;;  %v1585_v28 = vpack.c.bf16 %v1206_v27, %v1205_v26 }
  0xcb   :  { %999 = vmatpush1.bf16.msra.mxu0 %v1753_v33  ;;  %1042 = vmatpush1.bf16.msra.mxu1 %v1756_v34  ;;  %v1108_v33 = vld [vmem:[#allocation10 + $0xd0] sm:$0xff]  ;;  %v1109_v34 = vld [vmem:[#allocation10 + $0xd8] sm:$0xff] }
  0xcc   :  { %1000 = vmatprep.subr.bf16.mxu0 %v1761_v35  ;;  %1043 = vmatprep.subr.bf16.mxu1 %v1764_v36  ;;  %v1547_v35 = vpack.c.bf16 %v1091_v32, %v1090_v31  ;;  %v1549_v36 = vpack.c.bf16 %v1109_v34, %v1108_v33 }
  0xcf   :  { %1001 = vmatpush1.bf16.msra.mxu0 %v1759_v37  ;;  %1044 = vmatpush1.bf16.msra.mxu1 %v1762_v38  ;;  %v1092_v37 = vld [vmem:[#allocation10 + $0x50] sm:$0xff]  ;;  %v1093_v38 = vld [vmem:[#allocation10 + $0x58] sm:$0xff] }
  0xd0   :  { %1002 = vmatprep.subr.bf16.mxu0 %v1767_v39  ;;  %1045 = vmatprep.subr.bf16.mxu1 %v1770_v40  ;;  %v1110_v39 = vld [vmem:[#allocation10 + $0xe0] sm:$0xff]  ;;  %v1111_v40 = vld [vmem:[#allocation10 + $0xe8] sm:$0xff] }
  0xd3   :  { %1003 = vmatpush1.bf16.msra.mxu0 %v1765_v41  ;;  %1046 = vmatpush1.bf16.msra.mxu1 %v1768_v42  ;;  %v1551_v41 = vpack.c.bf16 %v1093_v38, %v1092_v37  ;;  %v1553_v42 = vpack.c.bf16 %v1111_v40, %v1110_v39 }
  0xd4   :  { %1004 = vmatprep.subr.bf16.mxu0 %v1773_v43  ;;  %1047 = vmatprep.subr.bf16.mxu1 %v1776_v44  ;;  %v1094_v43 = vld [vmem:[#allocation10 + $0x60] sm:$0xff]  ;;  %v1095_v44 = vld [vmem:[#allocation10 + $0x68] sm:$0xff] }
  0xd7   :  { %1005 = vmatpush1.bf16.msra.mxu0 %v1771_v45  ;;  %1048 = vmatpush1.bf16.msra.mxu1 %v1774_v46  ;;  %v1555_v45 = vpack.c.bf16 %v1095_v44, %v1094_v43  ;;  %v1112_v46 = vld [vmem:[#allocation10 + $0xf0] sm:$0xff] }
  0xd8   :  { %1006 = vmatprep.subr.bf16.mxu0 %v1779_v47  ;;  %1049 = vmatprep.subr.bf16.mxu1 %v1782_v48  ;;  %v1113_v47 = vld [vmem:[#allocation10 + $0xf8] sm:$0xff] }
  0xd9   :  { %v1557_v48 = vpack.c.bf16 %v1113_v47, %v1112_v46 }
  0xdb   :  { %1007 = vmatpush1.bf16.msra.mxu0 %v1777_v49  ;;  %1050 = vmatpush1.bf16.msra.mxu1 %v1780_v50  ;;  %v1096_v49 = vld [vmem:[#allocation10 + $0x70] sm:$0xff]  ;;  %v1097_v50 = vld [vmem:[#allocation10 + $0x78] sm:$0xff] }
  0xdc   :  { %1008 = vmatprep.subr.bf16.mxu0 %v1785_v51  ;;  %1051 = vmatprep.subr.bf16.mxu1 %v1788_v52  ;;  %v1559_v51 = vpack.c.bf16 %v1097_v50, %v1096_v49  ;;  %v1193_v52 = vld [vmem:[#allocation11] sm:$0xff] }
  0xdf   :  { %1009 = vmatpush1.bf16.msra.mxu0 %v1783_v53  ;;  %1052 = vmatpush1.bf16.msra.mxu1 %v1786_v54  ;;  %v1194_v53 = vld [vmem:[#allocation11 + $0x8] sm:$0xff]  ;;  %v1195_v54 = vld [vmem:[#allocation11 + $0x10] sm:$0xff] }
  0xe0   :  { %1010 = vmatprep.subr.bf16.mxu0 %v1791_v55  ;;  %1053 = vmatprep.subr.bf16.mxu1 %v1794_v56  ;;  %v1561_v55 = vpack.c.bf16 %v1194_v53, %v1193_v52  ;;  %v1196_v56 = vld [vmem:[#allocation11 + $0x18] sm:$0xff] }
  0xe3   :  { %1011 = vmatpush1.bf16.msra.mxu0 %v1789_v57  ;;  %1054 = vmatpush1.bf16.msra.mxu1 %v1792_v58  ;;  %v1565_v57 = vpack.c.bf16 %v1196_v56, %v1195_v54  ;;  %v1197_v58 = vld [vmem:[#allocation11 + $0x20] sm:$0xff] }
  0xe4   :  { %1012 = vmatprep.subr.bf16.mxu0 %v1797_v59  ;;  %1055 = vmatprep.subr.bf16.mxu1 %v1800_v60  ;;  %v1198_v59 = vld [vmem:[#allocation11 + $0x28] sm:$0xff] }
  0xe5   :  { %v1569_v60 = vpack.c.bf16 %v1198_v59, %v1197_v58 }
  0xe7   :  { %1013 = vmatpush1.bf16.msra.mxu0 %v1795_v61  ;;  %1056 = vmatpush1.bf16.msra.mxu1 %v1798_v62 }
  0xe8   :  { %1014 = vmatprep.subr.bf16.mxu0 %v1803_v63  ;;  %1057 = vmatprep.subr.bf16.mxu1 %v1806_v0 }
  0xeb   :  { %1015 = vmatpush1.bf16.msra.mxu0 %v1801_v3  ;;  %1058 = vmatpush1.bf16.msra.mxu1 %v1804_v4 }
  0xec   :  { %1530 = vmatprep.subr.bf16.mxu0 %v1529_v5  ;;  %1562 = vmatprep.subr.bf16.mxu1 %v1561_v55 }
  0xee   :  { %1017 = vmatmul.mubr.bf16.vlgmr.msra.gmra.mrb[0].mxu0 %v1807_v10  ;;  %1060 = vmatmul.mubr.bf16.vlgmr.msra.gmra.mrb[0].mxu1 %v1807_v10 }
  0xef   :  { %1532 = vmatpush3.bf16.msra.mxu0 %v1531_v11  ;;  %1564 = vmatpush3.bf16.msra.mxu1 %v1561_v55 }
  0xf0   :  { %1534 = vmatprep.subr.bf16.mxu0 %v1533_v12  ;;  %1566 = vmatprep.subr.bf16.mxu1 %v1565_v57 }
  0xf3   :  { %1536 = vmatpush3.bf16.msra.mxu0 %v1535_v17  ;;  %1568 = vmatpush3.bf16.msra.mxu1 %v1565_v57  ;;  %v1199_v17 = vld [vmem:[#allocation11 + $0x30] sm:$0xff] }
  0xf4   :  { %1538 = vmatprep.subr.bf16.mxu0 %v1537_v18  ;;  %1570 = vmatprep.subr.bf16.mxu1 %v1569_v60  ;;  %v1200_v18 = vld [vmem:[#allocation11 + $0x38] sm:$0xff] }
  0xf5   :  { %v1573_v19 = vpack.c.bf16 %v1200_v18, %v1199_v17 }
  0xf7   :  { %1540 = vmatpush3.bf16.msra.mxu0 %v1539_v23  ;;  %1572 = vmatpush3.bf16.msra.mxu1 %v1569_v60  ;;  %v1203_v23 = vld [vmem:[#allocation11 + $0x50] sm:$0xff] }
  0xf8   :  { %1542 = vmatprep.subr.bf16.mxu0 %v1541_v24  ;;  %1574 = vmatprep.subr.bf16.mxu1 %v1573_v19  ;;  %v1204_v24 = vld [vmem:[#allocation11 + $0x58] sm:$0xff] }
  0xf9   :  { %v1581_v25 = vpack.c.bf16 %v1204_v24, %v1203_v23 }
  0xfb   :  { %1544 = vmatpush3.bf16.msra.mxu0 %v1543_v29  ;;  %1576 = vmatpush3.bf16.msra.mxu1 %v1573_v19  ;;  %v1207_v29 = vld [vmem:[#allocation11 + $0x70] sm:$0xff] }
  0xfc   :  { %1546 = vmatprep.subr.bf16.mxu0 %v1545_v30  ;;  %1578 = vmatprep.subr.bf16.mxu1 %v1577_v22  ;;  %v1208_v30 = vld [vmem:[#allocation11 + $0x78] sm:$0xff] }
  0xfd   :  { %v1589_v31 = vpack.c.bf16 %v1208_v30, %v1207_v29 }
  0xff   :  { %1548 = vmatpush3.bf16.msra.mxu0 %v1547_v35  ;;  %1580 = vmatpush3.bf16.msra.mxu1 %v1577_v22 }
 0x100   :  { %1550 = vmatprep.subr.bf16.mxu0 %v1549_v36  ;;  %1582 = vmatprep.subr.bf16.mxu1 %v1581_v25 }
 0x103   :  { %1552 = vmatpush3.bf16.msra.mxu0 %v1551_v41  ;;  %1584 = vmatpush3.bf16.msra.mxu1 %v1581_v25 }
 0x104   :  { %1554 = vmatprep.subr.bf16.mxu0 %v1553_v42  ;;  %1586 = vmatprep.subr.bf16.mxu1 %v1585_v28 }
 0x107   :  { %1556 = vmatpush3.bf16.msra.mxu0 %v1555_v45  ;;  %1588 = vmatpush3.bf16.msra.mxu1 %v1585_v28 }
 0x108   :  { %1558 = vmatprep.subr.bf16.mxu0 %v1557_v48  ;;  %1590 = vmatprep.subr.bf16.mxu1 %v1589_v31 }
 0x10b   :  { %1560 = vmatpush3.bf16.msra.mxu0 %v1559_v51  ;;  %1592 = vmatpush3.bf16.msra.mxu1 %v1589_v31 }
 0x1c1   :  { %v1018_v61 = vpop.f32.mrb[0].mxu0  ;;  %v1061_v62 = vpop.f32.mrb[0].mxu1 }
 0x1c2   :  { %v1070_v63 = vmul.f32 %v1018_v61, %v1018_v61  ;;  %v1074_v0 = vmul.f32 %v1061_v62, %v1061_v62  ;;  %v1020_v1 = vpop.f32.mrb[1].mxu0  ;;  %v1063_v2 = vpop.f32.mrb[1].mxu1 }
 0x1c3   :  { %v1071_v3 = vmul.f32 %v1020_v1, %v1020_v1  ;;  %v1075_v4 = vmul.f32 %v1063_v2, %v1063_v2  ;;  %v1022_v5 = vpop.f32.mrb[2].mxu0  ;;  %v1065_v6 = vpop.f32.mrb[2].mxu1 }
 0x1c4   :  { %v1078_v7 = vadd.f32 %v1074_v0, %v1070_v63  ;;  %v1072_v8 = vmul.f32 %v1022_v5, %v1022_v5  ;;  %v1076_v9 = vmul.f32 %v1065_v6, %v1065_v6  ;;  %v1024_v10 = vpop.f32.mrb[3].mxu0  ;;  %v1067_v11 = vpop.f32.mrb[3].mxu1 }
 0x1c5   :  { %v1079_v12 = vadd.f32 %v1075_v4, %v1071_v3  ;;  %v1073_v13 = vmul.f32 %v1024_v10, %v1024_v10  ;;  %v1077_v14 = vmul.f32 %v1067_v11, %v1067_v11 }
 0x1c6   :  { %v1080_v15 = vadd.f32 %v1076_v9, %v1072_v8 }
 0x1c7   :  { %v1081_v16 = vadd.f32 %v1077_v14, %v1073_v13  ;;  %1178 = vmatprep.mubr.f32.mxu0 %v1079_v12 }
 0x1c8   :  { %1179 = vmatmul.mubr.f32.vlgmr.msra.gmra.mrb[4].mxu0 %v1078_v7 }
 0x1c9   :  { %1183 = vmatprep.mubr.f32.mxu0 %v1081_v16 }
 0x1cc   :  { %1184 = vmatmul.mubr.f32.gmra.mrb[6].mxu0 %v1080_v15 }
 0x29b   :  { %v1470_v32 = vpop.f32.mrb[4].mxu0 }
 0x29c   :  { %v1471_v33 = vpop.f32.mrb[5].mxu0 }
 0x29d   :  { %v1472_v34 = vadd.f32 %v1471_v33, %v1470_v32 }
 0x29f   :  { %v1181_v35 = vadd.f32 1e-06, %v1472_v34  ;;  %v1473_v36 = vpop.f32.mrb[6].mxu0 }
 0x2a0   :  { %v1474_v37 = vpop.f32.mrb[7].mxu0 }
 0x2a1   :  { %1810 = vlog2.f32 %v1181_v35  ;;  %v1475_v38 = vadd.f32 %v1474_v37, %v1473_v36 }
 0x2a3   :  { %v1186_v39 = vadd.f32 1e-06, %v1475_v38 }
 0x2a5   :  { %1812 = vlog2.f32 %v1186_v39 }
 0x2ab   :  { %v1811_v40 = vpop.eup %1810 }
 0x2ac   :  { %v1190_v41 = vmul.f32 0.6931472, %v1811_v40 }
 0x2ae   :  { %1526 = vmatprep.mubr.f32.mxu1 %v1190_v41 }
 0x2af   :  { %v1813_v42 = vpop.eup %1812 }
 0x2b0   :  { %v1192_v43 = vmul.f32 0.6931472, %v1813_v42 }
 0x2b2   :  { %1527 = vmatmul.mubr.f32.vlgmr.msra.gmra.mrb[4].mxu1 %v1192_v43 }
 0x385   :  { %v1528_v44 = vpop.f32.mrb[4].mxu1 }
 0x386   :  { %1285 = vst [vmem:[#allocation13 + $0x8] sm:$0xff] %v1528_v44  ;;  %v1275_v45 = vpop.f32.mrb[5].mxu1 }
 0x387   :  { %1284 = vst [vmem:[#allocation13] sm:$0xff] %v1275_v45 }
 0x388   :  { %1957 = shalt.err (!%p1954_p10)
}
 0x389   :  { %s1958_s26 = scalar_lea.hbm %s2135_s6, 256 }
 0x38a   :  { %p1959_p11 = scmp.ne.s32.totalorder %s2135_s6, %s1958_s26  ;;  %p1962_p12 = scmp.lt.u32.totalorder %s1958_s26, %s2135_s6 }
 0x38c   :  { %p1964_p13 = pnand %p1962_p12, %p1959_p11 }
 0x38e   :  { %1967 = shalt.err (!%p1964_p13)
}
 0x38f   :  { %1297 = dma.vmem_to_hbm [thread:$0]  %s1292_s24, 256, %s2135_s6, [#allocation4], %s1979_s7, %s1979_s7, %s1980_s8  }
 0x390   :  { %1976 = dma.done.wait [#allocation4], 256  }
 0x391   :  { %1977 = vsyncadd [#allocation4], 4294967040 }
 0x392   :  { %1301 = vsyncpa [#allocation3], 1 }
 0x393   :  { %1302 = vsyncpa [#allocation6], 1 }
 0x394   :  { %1303 = vsyncpa [#allocation9], 1 }
 0x395   :  { %1304 = vsyncpa [#allocation12], 1 }
 0x396   :  { %1305 = vsyncpa [#allocation4], 1 }

</bundles_post_ra>
